<compile_context>
chip_gen: v6e
topology: v6e:2x2x1
jax: 0.10.0
libtpu: 0.0.40
codegen_flags: <defaults>
</compile_context>

<pallas_src>
import jax
import jax.numpy as jnp
from jax.experimental import pallas as pl
from jax.experimental.pallas import tpu as pltpu


def _round_up(x, m):
    return ((x + m - 1) // m) * m


@jax.jit
def complex_conv2d(x, w_r, b_r, w_i, b_i):
    """x: (N, Cin, H, W) complex64. Weights: (Cout, Cin, K, K) f32. Bias: (Cout,) f32.
    Returns (N, Cout, Ho, Wo) complex64 (stride 1, padding 0, dilation 1, groups 1)."""
    N, Cin, H, W = x.shape
    Cout, _, K, _ = w_r.shape
    Ho, Wo = H - K + 1, W - K + 1
    C2 = 2 * Cin                    # stacked [real | imag] input channels
    HW = H * W                      # flattened spatial (lane axis of the input)
    HoW = Ho * W                    # full-width output columns (ow >= Wo trimmed later)
    KKC2 = K * K * C2               # real-embedded contraction depth (72 here)
    KPAD = _round_up(KKC2 + 1, 128)  # +1 bias row, padded to lane-dense 128

    # ---- input prep: real/imag split + channel stack; reshape is free (row-major)
    xr = jnp.real(x).astype(jnp.float32)
    xi = jnp.imag(x).astype(jnp.float32)
    x_ri = jnp.concatenate([xr, xi], axis=1).reshape(N, C2, HW)     # (N, 2Cin, H*W)

    # ---- real-embedded complex weights, transposed for the (2Cout,K)@(K,HoW) GEMM
    # row order (kh, kw, [real channels, imag channels]) matches the in-kernel taps
    wr = w_r.astype(jnp.float32).transpose(2, 3, 1, 0)              # (K, K, Cin, Cout)
    wi = w_i.astype(jnp.float32).transpose(2, 3, 1, 0)
    w_c = jnp.concatenate(
        [jnp.concatenate([wr, wi], axis=-1),       # real-input channels: [ wr | wi]
         jnp.concatenate([-wi, wr], axis=-1)],     # imag-input channels: [-wi | wr]
        axis=2).reshape(KKC2, 2 * Cout)
    bias_row = jnp.concatenate([(b_r - b_i), (b_r + b_i)]).astype(jnp.float32)[None, :]
    w_ct = jnp.concatenate(
        [w_c, bias_row, jnp.zeros((KPAD - KKC2 - 1, 2 * Cout), jnp.float32)],
        axis=0).T                                                    # (2Cout, KPAD)

    # ---- Pallas kernel: in-VMEM im2col + single real-embedded GEMM (bias fused)
    def kernel(x_ref, w_ref, out_ref, lhs_ref):
        # x_ref  : (1, C2, HW)      one image, channel-major, spatial in lanes (dense)
        # w_ref  : (2Cout, KPAD)    resident; col KKC2 = bias, cols > KKC2 = 0
        # out_ref: (1, 2Cout, HoW)  channel-major output, full-width columns
        # lhs_ref: (KPAD, HoW)      VMEM scratch: transposed patch tile (im2col)
        k_idx = jax.lax.broadcasted_iota(jnp.int32, (KPAD, HoW), 0)
        # zeros everywhere, "ones" in the bias contraction row -> bias folded into GEMM
        lhs_ref[...] = jnp.where(k_idx == KKC2, 1.0, 0.0).astype(jnp.float32)
        # gather the K*K taps: rows [t*C2, (t+1)*C2) <- x[:, start : start+HoW]
        # (clamped taps only touch columns with ow >= Wo, which are trimmed anyway)
        for t in range(K * K):
            kh, kw = divmod(t, K)
            start = kh * W + kw
            length = min(HoW, HW - start)
            lhs_ref[pl.ds(t * C2, C2), pl.ds(0, length)] = (
                x_ref[0, :, pl.ds(start, length)])
        out_ref[0] = jnp.dot(
            w_ref[...], lhs_ref[...],
            preferred_element_type=jnp.float32).astype(out_ref.dtype)

    out_flat = pl.pallas_call(
        kernel,
        out_shape=jax.ShapeDtypeStruct((N, 2 * Cout, HoW), jnp.float32),
        grid_spec=pltpu.PrefetchScalarGridSpec(
            num_scalar_prefetch=0,
            grid=(N,),                                               # 2 balanced steps
            in_specs=[
                pl.BlockSpec((1, C2, HW), lambda n: (n, 0, 0)),      # image (streamed)
                pl.BlockSpec((2 * Cout, KPAD), lambda n: (0, 0)),    # weights (resident)
            ],
            out_specs=pl.BlockSpec((1, 2 * Cout, HoW), lambda n: (n, 0, 0)),
            scratch_shapes=[pltpu.VMEM((KPAD, HoW), jnp.float32)],
        ),
        compiler_params=pltpu.CompilerParams(
            dimension_semantics=("parallel",),                       # v7x: one image/TC
        ),
    )(x_ri, w_ct)

    # ---- epilogue: free reshape, trim invalid columns, assemble complex (already NCHW)
    out = out_flat.reshape(N, 2 * Cout, Ho, W)[:, :, :, :Wo]
    return (out[:, :Cout] + 1j * out[:, Cout:]).astype(jnp.complex64)


# ---------------------------------------------------------------------------
# Reference (pure JAX, no Pallas) for correctness check
# ---------------------------------------------------------------------------
def _ref_complex_conv2d(x, w_r, b_r, w_i, b_i):
    def conv(inp, w, b):
        y = jax.lax.conv_general_dilated(
            inp, w, window_strides=(1, 1), padding="VALID",
            dimension_numbers=("NCHW", "OIHW", "NCHW"))
        return y + b.reshape(1, -1, 1, 1)
    xr = jnp.real(x).astype(jnp.float32)
    xi = jnp.imag(x).astype(jnp.float32)
    real = conv(xr, w_r, b_r) - conv(xi, w_i, b_i)
    imag = conv(xi, w_r, b_r) + conv(xr, w_i, b_i)
    return (real + 1j * imag).astype(jnp.complex64)


if __name__ == "__main__":
    # Small shapes consistent with the module: batch=2, in_channels=4, out_channels=8,
    # spatial=16, kernel_size=3, stride=1, padding=0 -> output spatial 14.
    N, Cin, H, W = 2, 4, 16, 16
    Cout, K = 8, 3

    key = jax.random.PRNGKey(0)
    k1, k2, k3, k4, k5, k6 = jax.random.split(key, 6)

    w_r = 0.1 * jax.random.normal(k1, (Cout, Cin, K, K), jnp.float32)
    b_r = 0.1 * jax.random.normal(k2, (Cout,), jnp.float32)
    w_i = 0.1 * jax.random.normal(k3, (Cout, Cin, K, K), jnp.float32)
    b_i = 0.1 * jax.random.normal(k4, (Cout,), jnp.float32)

    x_real = jax.random.normal(k5, (N, Cin, H, W), jnp.float32)
    x_imag = jax.random.normal(k6, (N, Cin, H, W), jnp.float32)
    x = (x_real + 1j * x_imag).astype(jnp.complex64)

    out = complex_conv2d(x, w_r, b_r, w_i, b_i)
    out = jax.block_until_ready(out)

    ref = _ref_complex_conv2d(x, w_r, b_r, w_i, b_i)
    assert out.shape == (N, Cout, H - K + 1, W - K + 1)
    assert out.dtype == jnp.complex64
    assert jnp.allclose(out, ref, atol=1e-4, rtol=1e-4)

    print("KERNEL_OK")
</pallas_src>

<mosaic_0001>
module attributes {stable_mosaic.version = 11 : i64} {
  func.func @kernel(%arg0: i32, %arg1: memref<1x8x256xf32, #tpu.memory_space<vmem>>, %arg2: memref<16x128xf32, #tpu.memory_space<vmem>>, %arg3: memref<1x16x224xf32, #tpu.memory_space<vmem>>, %arg4: memref<128x224xf32, #tpu.memory_space<vmem>>) attributes {dimension_semantics = [#tpu.dimension_semantics<parallel>], iteration_bounds = array<i64: 2>, scalar_prefetch = 0 : i64, scratch_operands = 1 : i64, tpu.core_type = #tpu.core_type<tc>, window_params = [{transform_indices = @transform_0, window_bounds = array<i64: 1, 8, 256>}, {pipeline_mode = #tpu.pipeline_mode<synchronous>, transform_indices = @transform_1, window_bounds = array<i64: 16, 128>}, {transform_indices = @transform_2, window_bounds = array<i64: 1, 16, 224>}]} {
    %0 = tpu.iota {dimensions = array<i32: 0>} : vector<128x224xi32>
    %c72_i32 = arith.constant 72 : i32
    %1 = vector.broadcast %c72_i32 : i32 to vector<128x224xi32>
    %2 = arith.cmpi eq, %0, %1 : vector<128x224xi32>
    %cst = arith.constant 1.000000e+00 : f32
    %cst_0 = arith.constant 0.000000e+00 : f32
    %3 = vector.broadcast %cst : f32 to vector<128x224xf32>
    %4 = vector.broadcast %cst_0 : f32 to vector<128x224xf32>
    %5 = arith.select %2, %3, %4 : vector<128x224xi1>, vector<128x224xf32>
    %c0 = arith.constant 0 : index
    %c0_1 = arith.constant 0 : index
    %6 = vector.load %arg4[%c0, %c0_1] : memref<128x224xf32, #tpu.memory_space<vmem>>, vector<128x224xf32>
    tpu.vector_store %arg4[%c0, %c0_1], %5 {strides = array<i32>} : memref<128x224xf32, #tpu.memory_space<vmem>>, vector<128x224xf32>,
    %c0_2 = arith.constant 0 : index
    %c0_3 = arith.constant 0 : index
    %c0_4 = arith.constant 0 : index
    %7 = vector.load %arg1[%c0_2, %c0_3, %c0_4] : memref<1x8x256xf32, #tpu.memory_space<vmem>>, vector<1x8x224xf32>
    %8 = vector.shape_cast %7 : vector<1x8x224xf32> to vector<8x224xf32>
    %c0_5 = arith.constant 0 : index
    %c0_6 = arith.constant 0 : index
    %9 = vector.load %arg4[%c0_5, %c0_6] : memref<128x224xf32, #tpu.memory_space<vmem>>, vector<8x224xf32>
    tpu.vector_store %arg4[%c0_5, %c0_6], %8 {strides = array<i32>} : memref<128x224xf32, #tpu.memory_space<vmem>>, vector<8x224xf32>,
    %c0_7 = arith.constant 0 : index
    %c0_8 = arith.constant 0 : index
    %c1 = arith.constant 1 : index
    %10 = vector.load %arg1[%c0_7, %c0_8, %c1] : memref<1x8x256xf32, #tpu.memory_space<vmem>>, vector<1x8x224xf32>
    %11 = vector.shape_cast %10 : vector<1x8x224xf32> to vector<8x224xf32>
    %c8 = arith.constant 8 : index
    %c0_9 = arith.constant 0 : index
    %12 = vector.load %arg4[%c8, %c0_9] : memref<128x224xf32, #tpu.memory_space<vmem>>, vector<8x224xf32>
    tpu.vector_store %arg4[%c8, %c0_9], %11 {strides = array<i32>} : memref<128x224xf32, #tpu.memory_space<vmem>>, vector<8x224xf32>,
    %c0_10 = arith.constant 0 : index
    %c0_11 = arith.constant 0 : index
    %c2 = arith.constant 2 : index
    %13 = vector.load %arg1[%c0_10, %c0_11, %c2] : memref<1x8x256xf32, #tpu.memory_space<vmem>>, vector<1x8x224xf32>
    %14 = vector.shape_cast %13 : vector<1x8x224xf32> to vector<8x224xf32>
    %c16 = arith.constant 16 : index
    %c0_12 = arith.constant 0 : index
    %15 = vector.load %arg4[%c16, %c0_12] : memref<128x224xf32, #tpu.memory_space<vmem>>, vector<8x224xf32>
    tpu.vector_store %arg4[%c16, %c0_12], %14 {strides = array<i32>} : memref<128x224xf32, #tpu.memory_space<vmem>>, vector<8x224xf32>,
    %c0_13 = arith.constant 0 : index
    %c0_14 = arith.constant 0 : index
    %c16_15 = arith.constant 16 : index
    %16 = vector.load %arg1[%c0_13, %c0_14, %c16_15] : memref<1x8x256xf32, #tpu.memory_space<vmem>>, vector<1x8x224xf32>
    %17 = vector.shape_cast %16 : vector<1x8x224xf32> to vector<8x224xf32>
    %c24 = arith.constant 24 : index
    %c0_16 = arith.constant 0 : index
    %18 = vector.load %arg4[%c24, %c0_16] : memref<128x224xf32, #tpu.memory_space<vmem>>, vector<8x224xf32>
    tpu.vector_store %arg4[%c24, %c0_16], %17 {strides = array<i32>} : memref<128x224xf32, #tpu.memory_space<vmem>>, vector<8x224xf32>,
    %c0_17 = arith.constant 0 : index
    %c0_18 = arith.constant 0 : index
    %c17 = arith.constant 17 : index
    %19 = vector.load %arg1[%c0_17, %c0_18, %c17] : memref<1x8x256xf32, #tpu.memory_space<vmem>>, vector<1x8x224xf32>
    %20 = vector.shape_cast %19 : vector<1x8x224xf32> to vector<8x224xf32>
    %c32 = arith.constant 32 : index
    %c0_19 = arith.constant 0 : index
    %21 = vector.load %arg4[%c32, %c0_19] : memref<128x224xf32, #tpu.memory_space<vmem>>, vector<8x224xf32>
    tpu.vector_store %arg4[%c32, %c0_19], %20 {strides = array<i32>} : memref<128x224xf32, #tpu.memory_space<vmem>>, vector<8x224xf32>,
    %c0_20 = arith.constant 0 : index
    %c0_21 = arith.constant 0 : index
    %c18 = arith.constant 18 : index
    %22 = vector.load %arg1[%c0_20, %c0_21, %c18] : memref<1x8x256xf32, #tpu.memory_space<vmem>>, vector<1x8x224xf32>
    %23 = vector.shape_cast %22 : vector<1x8x224xf32> to vector<8x224xf32>
    %c40 = arith.constant 40 : index
    %c0_22 = arith.constant 0 : index
    %24 = vector.load %arg4[%c40, %c0_22] : memref<128x224xf32, #tpu.memory_space<vmem>>, vector<8x224xf32>
    tpu.vector_store %arg4[%c40, %c0_22], %23 {strides = array<i32>} : memref<128x224xf32, #tpu.memory_space<vmem>>, vector<8x224xf32>,
    %c0_23 = arith.constant 0 : index
    %c0_24 = arith.constant 0 : index
    %c32_25 = arith.constant 32 : index
    %25 = vector.load %arg1[%c0_23, %c0_24, %c32_25] : memref<1x8x256xf32, #tpu.memory_space<vmem>>, vector<1x8x224xf32>
    %26 = vector.shape_cast %25 : vector<1x8x224xf32> to vector<8x224xf32>
    %c48 = arith.constant 48 : index
    %c0_26 = arith.constant 0 : index
    %27 = vector.load %arg4[%c48, %c0_26] : memref<128x224xf32, #tpu.memory_space<vmem>>, vector<8x224xf32>
    tpu.vector_store %arg4[%c48, %c0_26], %26 {strides = array<i32>} : memref<128x224xf32, #tpu.memory_space<vmem>>, vector<8x224xf32>,
    %c0_27 = arith.constant 0 : index
    %c0_28 = arith.constant 0 : index
    %c33 = arith.constant 33 : index
    %28 = vector.load %arg1[%c0_27, %c0_28, %c33] : memref<1x8x256xf32, #tpu.memory_space<vmem>>, vector<1x8x223xf32>
    %29 = vector.shape_cast %28 : vector<1x8x223xf32> to vector<8x223xf32>
    %c56 = arith.constant 56 : index
    %c0_29 = arith.constant 0 : index
    %30 = vector.load %arg4[%c56, %c0_29] : memref<128x224xf32, #tpu.memory_space<vmem>>, vector<8x223xf32>
    tpu.vector_store %arg4[%c56, %c0_29], %29 {strides = array<i32>} : memref<128x224xf32, #tpu.memory_space<vmem>>, vector<8x223xf32>,
    %c0_30 = arith.constant 0 : index
    %c0_31 = arith.constant 0 : index
    %c34 = arith.constant 34 : index
    %31 = vector.load %arg1[%c0_30, %c0_31, %c34] : memref<1x8x256xf32, #tpu.memory_space<vmem>>, vector<1x8x222xf32>
    %32 = vector.shape_cast %31 : vector<1x8x222xf32> to vector<8x222xf32>
    %c64 = arith.constant 64 : index
    %c0_32 = arith.constant 0 : index
    %33 = vector.load %arg4[%c64, %c0_32] : memref<128x224xf32, #tpu.memory_space<vmem>>, vector<8x222xf32>
    tpu.vector_store %arg4[%c64, %c0_32], %32 {strides = array<i32>} : memref<128x224xf32, #tpu.memory_space<vmem>>, vector<8x222xf32>,
    %c0_33 = arith.constant 0 : index
    %c0_34 = arith.constant 0 : index
    %34 = vector.load %arg2[%c0_33, %c0_34] : memref<16x128xf32, #tpu.memory_space<vmem>>, vector<16x128xf32>
    %c0_35 = arith.constant 0 : index
    %c0_36 = arith.constant 0 : index
    %35 = vector.load %arg4[%c0_35, %c0_36] : memref<128x224xf32, #tpu.memory_space<vmem>>, vector<128x224xf32>
    %cst_37 = arith.constant dense<0.000000e+00> : vector<16x224xf32>
    %36 = tpu.matmul %34, %35, %cst_37 {dimension_numbers = #tpu.dot_dimension_numbers<[1], [0], [0], [1], [0, 0, 1, 1], [], []>} : vector<16x128xf32>, vector<128x224xf32>, vector<16x224xf32> -> vector<16x224xf32>
    %c0_38 = arith.constant 0 : index
    %c0_39 = arith.constant 0 : index
    %c0_40 = arith.constant 0 : index
    %37 = vector.load %arg3[%c0_38, %c0_39, %c0_40] : memref<1x16x224xf32, #tpu.memory_space<vmem>>, vector<1x16x224xf32>
    %38 = vector.shape_cast %37 : vector<1x16x224xf32> to vector<16x224xf32>
    %39 = vector.shape_cast %36 : vector<16x224xf32> to vector<1x16x224xf32>
    tpu.vector_store %arg3[%c0_38, %c0_39, %c0_40], %39 {strides = array<i32>} : memref<1x16x224xf32, #tpu.memory_space<vmem>>, vector<1x16x224xf32>,
    return
  }
  func.func @transform_0(%arg0: i32) -> (i32, i32, i32) {
    %c0_i32 = arith.constant 0 : i32
    %c0_i32_0 = arith.constant 0 : i32
    %c0_i32_1 = arith.constant 0 : i32
    return %arg0, %c0_i32, %c0_i32_0 : i32, i32, i32
  }
  func.func @transform_1(%arg0: i32) -> (i32, i32) {
    %c0_i32 = arith.constant 0 : i32
    %c0_i32_0 = arith.constant 0 : i32
    %c0_i32_1 = arith.constant 0 : i32
    return %c0_i32, %c0_i32_0 : i32, i32
  }
  func.func @transform_2(%arg0: i32) -> (i32, i32, i32) {
    %c0_i32 = arith.constant 0 : i32
    %c0_i32_0 = arith.constant 0 : i32
    %c0_i32_1 = arith.constant 0 : i32
    return %arg0, %c0_i32, %c0_i32_0 : i32, i32, i32
  }
}

</mosaic_0001>

<bundles_post_ra>
// kernel: custom-call.1
= control target key start
LH: loop header
LB: loop body
LE: loop exit
PB: predicated region body
PF: predicated region fallthrough
CT: control target
= control target key end

     0   :  { %s51_s0 = inlined_call_operand.hbm [shape: c64[2,4,16,16], index: 0, kind: input, shape index: {}]   ;;  %s52_s1 = inlined_call_operand.vmem [shape: f32[2,4,16,16], index: 1, kind: output, shape index: {}]  }
   0x1   :  { %s2_s8 = scalar_lea.hbm %s51_s0, 2048 }
   0x2   :  { %3 = vsyncpa [#allocation0], 0  ;;  %s4_s11 = sshll.u32 %s52_s1, 4  ;;  %s5_s11 = int_to_ptr.vmem [resolvable:$true] %s4_s11 }
   0x3   :  { %s20_s12 = scalar_lea.vmem %s5_s11, 2048  ;;  %p25_p1 = scmp.lt.s32.totalorder %s5_s11, %s5_s11 }
   0x4   :  { %p21_p0 = scmp.ne.s32.totalorder %s5_s11, %s20_s12  ;;  %p26_p2 = scmp.lt.s32.totalorder %s20_s12, %s20_s12 }
   0x6   :  { %p27_p3 = por %p26_p2, %p25_p1 }
   0x8   :  { %p28_p4 = pnand %p27_p3, %p21_p0 }
   0xa   :  { %31 = shalt.err (!%p28_p4)  }
   0xb   :  { %7 = dma.hbm_to_vmem [thread:$0]  %s2_s8, 2048, %s5_s11, [#allocation0] }
   0xc   :  { %33 = dma.done.wait [#allocation0], 2048  }
   0xd   :  { %34 = vsyncadd [#allocation0], 4294965248 }
   0xe   :  { %9 = vsyncpa [#allocation0], 1 }

// kernel: custom-call
= control target key start
LH: loop header
LB: loop body
LE: loop exit
PB: predicated region body
PF: predicated region fallthrough
CT: control target
= control target key end

     0   :  { %2 = vsyncpa [#allocation0], 0  ;;  %s47_s0 = inlined_call_operand.hbm [shape: c64[2,4,16,16], index: 0, kind: input, shape index: {}]   ;;  %s48_s1 = inlined_call_operand.vmem [shape: f32[2,4,16,16], index: 1, kind: output, shape index: {}]  }
   0x1   :  { %s3_s8 = sshll.u32 %s48_s1, 4  ;;  %s4_s8 = int_to_ptr.vmem [resolvable:$true] %s3_s8 }
   0x2   :  { %s17_s9 = scalar_lea.vmem %s4_s8, 2048  ;;  %p22_p1 = scmp.lt.s32.totalorder %s4_s8, %s4_s8 }
   0x3   :  { %p18_p0 = scmp.ne.s32.totalorder %s4_s8, %s17_s9  ;;  %p23_p2 = scmp.lt.s32.totalorder %s17_s9, %s17_s9 }
   0x5   :  { %p24_p3 = por %p23_p2, %p22_p1 }
   0x7   :  { %p25_p4 = pnand %p24_p3, %p18_p0 }
   0x9   :  { %28 = shalt.err (!%p25_p4)  }
   0xa   :  { %6 = dma.hbm_to_vmem [thread:$0]  %s47_s0, 2048, %s4_s8, [#allocation0] }
   0xb   :  { %29 = dma.done.wait [#allocation0], 2048  }
   0xc   :  { %30 = vsyncadd [#allocation0], 4294965248 }
   0xd   :  { %8 = vsyncpa [#allocation0], 1 }

// kernel: custom-call.2
= control target key start
LH: loop header
LB: loop body
LE: loop exit
PB: predicated region body
PF: predicated region fallthrough
CT: control target
= control target key end

     0   :  { %s812_s0 = inlined_call_operand.vmem [shape: f32[2,8,14,14], index: 0, kind: input, shape index: {}]   ;;  %s813_s2 = inlined_call_operand.vmem [shape: c64[2,8,14,14], index: 2, kind: output, shape index: {}]   ;;  %s814_s1 = inlined_call_operand.vmem [shape: f32[2,8,14,14], index: 1, kind: input, shape index: {}]  }
   0x1   :  { %v5_v0 = vld [vmem:[%s812_s0] sm:$0xff]  ;;  %v288_v1 = vld [vmem:[%s812_s0 + $0x8] sm:$0xff]  ;;  %v290_v2 = vld [vmem:[%s812_s0 + $0x10] sm:$0xff] }
   0x2   :  { %6 = vst [vmem:[%s813_s2] sm:$0xff] %v5_v0  ;;  %289 = vst [vmem:[%s813_s2 + $0x8] sm:$0xff] %v288_v1  ;;  %v292_v3 = vld [vmem:[%s812_s0 + $0x18] sm:$0xff]  ;;  %v294_v4 = vld [vmem:[%s812_s0 + $0x20] sm:$0xff] }
   0x3   :  { %291 = vst [vmem:[%s813_s2 + $0x10] sm:$0xff] %v290_v2  ;;  %v296_v5 = vld [vmem:[%s812_s0 + $0x28] sm:$0xff]  ;;  %293 = vst [vmem:[%s813_s2 + $0x18] sm:$0xff] %v292_v3  ;;  %v298_v6 = vld [vmem:[%s812_s0 + $0x30] sm:$0xff] }
   0x4   :  { %295 = vst [vmem:[%s813_s2 + $0x20] sm:$0xff] %v294_v4  ;;  %297 = vst [vmem:[%s813_s2 + $0x28] sm:$0xff] %v296_v5  ;;  %v300_v7 = vld [vmem:[%s812_s0 + $0x38] sm:$0xff]  ;;  %v302_v8 = vld [vmem:[%s812_s0 + $0x40] sm:$0xff] }
   0x5   :  { %299 = vst [vmem:[%s813_s2 + $0x30] sm:$0xff] %v298_v6  ;;  %301 = vst [vmem:[%s813_s2 + $0x38] sm:$0xff] %v300_v7  ;;  %v304_v9 = vld [vmem:[%s812_s0 + $0x48] sm:$0xff]  ;;  %v306_v10 = vld [vmem:[%s812_s0 + $0x50] sm:$0xff] }
   0x6   :  { %303 = vst [vmem:[%s813_s2 + $0x40] sm:$0xff] %v302_v8  ;;  %v308_v11 = vld [vmem:[%s812_s0 + $0x58] sm:$0xff]  ;;  %305 = vst [vmem:[%s813_s2 + $0x48] sm:$0xff] %v304_v9  ;;  %v310_v12 = vld [vmem:[%s812_s0 + $0x60] sm:$0xff] }
   0x7   :  { %307 = vst [vmem:[%s813_s2 + $0x50] sm:$0xff] %v306_v10  ;;  %309 = vst [vmem:[%s813_s2 + $0x58] sm:$0xff] %v308_v11  ;;  %v312_v13 = vld [vmem:[%s812_s0 + $0x68] sm:$0xff]  ;;  %v314_v14 = vld [vmem:[%s812_s0 + $0x70] sm:$0xff] }
   0x8   :  { %311 = vst [vmem:[%s813_s2 + $0x60] sm:$0xff] %v310_v12  ;;  %313 = vst [vmem:[%s813_s2 + $0x68] sm:$0xff] %v312_v13  ;;  %v316_v15 = vld [vmem:[%s812_s0 + $0x78] sm:$0xff]  ;;  %v318_v16 = vld [vmem:[%s812_s0 + $0x80] sm:$0xff] }
   0x9   :  { %315 = vst [vmem:[%s813_s2 + $0x70] sm:$0xff] %v314_v14  ;;  %v320_v17 = vld [vmem:[%s812_s0 + $0x88] sm:$0xff]  ;;  %317 = vst [vmem:[%s813_s2 + $0x78] sm:$0xff] %v316_v15  ;;  %v322_v18 = vld [vmem:[%s812_s0 + $0x90] sm:$0xff] }
   0xa   :  { %319 = vst [vmem:[%s813_s2 + $0x80] sm:$0xff] %v318_v16  ;;  %321 = vst [vmem:[%s813_s2 + $0x88] sm:$0xff] %v320_v17  ;;  %v324_v19 = vld [vmem:[%s812_s0 + $0x98] sm:$0xff]  ;;  %v326_v20 = vld [vmem:[%s812_s0 + $0xa0] sm:$0xff] }
   0xb   :  { %323 = vst [vmem:[%s813_s2 + $0x90] sm:$0xff] %v322_v18  ;;  %325 = vst [vmem:[%s813_s2 + $0x98] sm:$0xff] %v324_v19  ;;  %v328_v21 = vld [vmem:[%s812_s0 + $0xa8] sm:$0xff]  ;;  %v330_v22 = vld [vmem:[%s812_s0 + $0xb0] sm:$0xff] }
   0xc   :  { %327 = vst [vmem:[%s813_s2 + $0xa0] sm:$0xff] %v326_v20  ;;  %v332_v23 = vld [vmem:[%s812_s0 + $0xb8] sm:$0xff]  ;;  %329 = vst [vmem:[%s813_s2 + $0xa8] sm:$0xff] %v328_v21  ;;  %v334_v24 = vld [vmem:[%s812_s0 + $0xc0] sm:$0xff] }
   0xd   :  { %331 = vst [vmem:[%s813_s2 + $0xb0] sm:$0xff] %v330_v22  ;;  %333 = vst [vmem:[%s813_s2 + $0xb8] sm:$0xff] %v332_v23  ;;  %v336_v25 = vld [vmem:[%s812_s0 + $0xc8] sm:$0xff]  ;;  %v338_v26 = vld [vmem:[%s812_s0 + $0xd0] sm:$0xff] }
   0xe   :  { %335 = vst [vmem:[%s813_s2 + $0xc0] sm:$0xff] %v334_v24  ;;  %337 = vst [vmem:[%s813_s2 + $0xc8] sm:$0xff] %v336_v25  ;;  %v340_v27 = vld [vmem:[%s812_s0 + $0xd8] sm:$0xff]  ;;  %v342_v28 = vld [vmem:[%s812_s0 + $0xe0] sm:$0xff] }
   0xf   :  { %339 = vst [vmem:[%s813_s2 + $0xd0] sm:$0xff] %v338_v26  ;;  %v344_v29 = vld [vmem:[%s812_s0 + $0xe8] sm:$0xff]  ;;  %341 = vst [vmem:[%s813_s2 + $0xd8] sm:$0xff] %v340_v27  ;;  %v346_v30 = vld [vmem:[%s812_s0 + $0xf0] sm:$0xff] }
  0x10   :  { %343 = vst [vmem:[%s813_s2 + $0xe0] sm:$0xff] %v342_v28  ;;  %345 = vst [vmem:[%s813_s2 + $0xe8] sm:$0xff] %v344_v29  ;;  %v348_v31 = vld [vmem:[%s812_s0 + $0xf8] sm:$0xff]  ;;  %v131_v32 = vld [vmem:[%s814_s1] sm:$0xff] }
  0x11   :  { %347 = vst [vmem:[%s813_s2 + $0xf0] sm:$0xff] %v346_v30  ;;  %349 = vst [vmem:[%s813_s2 + $0xf8] sm:$0xff] %v348_v31  ;;  %v351_v33 = vld [vmem:[%s814_s1 + $0x8] sm:$0xff]  ;;  %v353_v34 = vld [vmem:[%s814_s1 + $0x10] sm:$0xff] }
  0x12   :  { %350 = vst [vmem:[%s813_s2 + $0x100] sm:$0xff] %v131_v32  ;;  %v355_v35 = vld [vmem:[%s814_s1 + $0x18] sm:$0xff]  ;;  %352 = vst [vmem:[%s813_s2 + $0x108] sm:$0xff] %v351_v33  ;;  %v357_v36 = vld [vmem:[%s814_s1 + $0x20] sm:$0xff] }
  0x13   :  { %354 = vst [vmem:[%s813_s2 + $0x110] sm:$0xff] %v353_v34  ;;  %356 = vst [vmem:[%s813_s2 + $0x118] sm:$0xff] %v355_v35  ;;  %v359_v37 = vld [vmem:[%s814_s1 + $0x28] sm:$0xff]  ;;  %v361_v38 = vld [vmem:[%s814_s1 + $0x30] sm:$0xff] }
  0x14   :  { %358 = vst [vmem:[%s813_s2 + $0x120] sm:$0xff] %v357_v36  ;;  %360 = vst [vmem:[%s813_s2 + $0x128] sm:$0xff] %v359_v37  ;;  %v363_v39 = vld [vmem:[%s814_s1 + $0x38] sm:$0xff]  ;;  %v365_v40 = vld [vmem:[%s814_s1 + $0x40] sm:$0xff] }
  0x15   :  { %362 = vst [vmem:[%s813_s2 + $0x130] sm:$0xff] %v361_v38  ;;  %v367_v41 = vld [vmem:[%s814_s1 + $0x48] sm:$0xff]  ;;  %364 = vst [vmem:[%s813_s2 + $0x138] sm:$0xff] %v363_v39  ;;  %v369_v42 = vld [vmem:[%s814_s1 + $0x50] sm:$0xff] }
  0x16   :  { %366 = vst [vmem:[%s813_s2 + $0x140] sm:$0xff] %v365_v40  ;;  %368 = vst [vmem:[%s813_s2 + $0x148] sm:$0xff] %v367_v41  ;;  %v371_v43 = vld [vmem:[%s814_s1 + $0x58] sm:$0xff]  ;;  %v373_v44 = vld [vmem:[%s814_s1 + $0x60] sm:$0xff] }
  0x17   :  { %370 = vst [vmem:[%s813_s2 + $0x150] sm:$0xff] %v369_v42  ;;  %372 = vst [vmem:[%s813_s2 + $0x158] sm:$0xff] %v371_v43  ;;  %v375_v45 = vld [vmem:[%s814_s1 + $0x68] sm:$0xff]  ;;  %v377_v46 = vld [vmem:[%s814_s1 + $0x70] sm:$0xff] }
  0x18   :  { %374 = vst [vmem:[%s813_s2 + $0x160] sm:$0xff] %v373_v44  ;;  %v379_v47 = vld [vmem:[%s814_s1 + $0x78] sm:$0xff]  ;;  %376 = vst [vmem:[%s813_s2 + $0x168] sm:$0xff] %v375_v45  ;;  %v381_v48 = vld [vmem:[%s814_s1 + $0x80] sm:$0xff] }
  0x19   :  { %378 = vst [vmem:[%s813_s2 + $0x170] sm:$0xff] %v377_v46  ;;  %380 = vst [vmem:[%s813_s2 + $0x178] sm:$0xff] %v379_v47  ;;  %v383_v49 = vld [vmem:[%s814_s1 + $0x88] sm:$0xff]  ;;  %v385_v50 = vld [vmem:[%s814_s1 + $0x90] sm:$0xff] }
  0x1a   :  { %382 = vst [vmem:[%s813_s2 + $0x180] sm:$0xff] %v381_v48  ;;  %384 = vst [vmem:[%s813_s2 + $0x188] sm:$0xff] %v383_v49  ;;  %v387_v51 = vld [vmem:[%s814_s1 + $0x98] sm:$0xff]  ;;  %v389_v52 = vld [vmem:[%s814_s1 + $0xa0] sm:$0xff] }
  0x1b   :  { %386 = vst [vmem:[%s813_s2 + $0x190] sm:$0xff] %v385_v50  ;;  %v391_v53 = vld [vmem:[%s814_s1 + $0xa8] sm:$0xff]  ;;  %388 = vst [vmem:[%s813_s2 + $0x198] sm:$0xff] %v387_v51  ;;  %v393_v54 = vld [vmem:[%s814_s1 + $0xb0] sm:$0xff] }
  0x1c   :  { %390 = vst [vmem:[%s813_s2 + $0x1a0] sm:$0xff] %v389_v52  ;;  %392 = vst [vmem:[%s813_s2 + $0x1a8] sm:$0xff] %v391_v53  ;;  %v395_v55 = vld [vmem:[%s814_s1 + $0xb8] sm:$0xff]  ;;  %v397_v56 = vld [vmem:[%s814_s1 + $0xc0] sm:$0xff] }
  0x1d   :  { %394 = vst [vmem:[%s813_s2 + $0x1b0] sm:$0xff] %v393_v54  ;;  %396 = vst [vmem:[%s813_s2 + $0x1b8] sm:$0xff] %v395_v55  ;;  %v399_v57 = vld [vmem:[%s814_s1 + $0xc8] sm:$0xff]  ;;  %v401_v58 = vld [vmem:[%s814_s1 + $0xd0] sm:$0xff] }
  0x1e   :  { %398 = vst [vmem:[%s813_s2 + $0x1c0] sm:$0xff] %v397_v56  ;;  %v403_v59 = vld [vmem:[%s814_s1 + $0xd8] sm:$0xff]  ;;  %400 = vst [vmem:[%s813_s2 + $0x1c8] sm:$0xff] %v399_v57  ;;  %v405_v60 = vld [vmem:[%s814_s1 + $0xe0] sm:$0xff] }
  0x1f   :  { %402 = vst [vmem:[%s813_s2 + $0x1d0] sm:$0xff] %v401_v58  ;;  %404 = vst [vmem:[%s813_s2 + $0x1d8] sm:$0xff] %v403_v59  ;;  %v407_v61 = vld [vmem:[%s814_s1 + $0xe8] sm:$0xff]  ;;  %v409_v62 = vld [vmem:[%s814_s1 + $0xf0] sm:$0xff] }
  0x20   :  { %406 = vst [vmem:[%s813_s2 + $0x1e0] sm:$0xff] %v405_v60  ;;  %408 = vst [vmem:[%s813_s2 + $0x1e8] sm:$0xff] %v407_v61  ;;  %v411_v63 = vld [vmem:[%s814_s1 + $0xf8] sm:$0xff] }
  0x21   :  { %410 = vst [vmem:[%s813_s2 + $0x1f0] sm:$0xff] %v409_v62  ;;  %412 = vst [vmem:[%s813_s2 + $0x1f8] sm:$0xff] %v411_v63 }

// kernel: complex_conv2d.1
= control target key start
LH: loop header
LB: loop body
LE: loop exit
PB: predicated region body
PF: predicated region fallthrough
CT: control target
= control target key end

     0   :  { %s608_s9 = smov 0   ;;  %s712_s0 = inlined_call_operand.vmem [shape: f32[2,8,256], index: 0, kind: input, shape index: {}]   ;;  %s713_s1 = inlined_call_operand.vmem [shape: f32[16,128], index: 1, kind: input, shape index: {}]   ;;  %s714_s2 = inlined_call_operand.vmem [shape: f32[2,16,224], index: 2, kind: output, shape index: {}]  }
   0x1 LB: > { %s511_s10 = sadd.s32 4294967295, %s581_s9   ;;  %p515_p0 = scmp.ge.s32.totalorder %s581_s9, 1  ;;  %s581_s9 = sphi %s608_s9, %s12_s9  }
   0x2   : > { %p112_p1 = scmp.lt.s32.totalorder %s581_s9, 3 }
   0x4   : > { %p113_p2 = pnand %p515_p0, %p112_p1 }
   0x5   : > { %p616_p3 = scmp.lt.s32.totalorder (!%p113_p2), %s511_s10, 1  ;;  %s584_s16 = smov (!%p113_p2), 94  }
   0x6   : > { %116 = sbr.rel (%p113_p2) target bundleno = 372 (0x174), region = 28  ;;  %s585_s17 = smov (!%p113_p2), 95  }
   0x7   : > { %s586_s18 = smov (!%p113_p2), 96   ;;  %s587_s19 = smov (!%p113_p2), 110  }
   0x8   : > { %s588_s20 = smov (!%p113_p2), 111   ;;  %s590_s21 = smov (!%p113_p2), 112  }
   0x9   : > { %s591_s22 = smov (!%p113_p2), 126   ;;  %s592_s23 = smov (!%p113_p2), 127  }
   0xb   : > { %vm194_vm0 = vcmask 785408   ;;  %v583_v0 = vmov 0.0   ;;  %v144_v1 = vlaneseq  ;;  %s717_s10 = smov (!%p616_p3, %s511_s10), 1  ;;  %v589_v14 = vmov 1.0   ;;  %v341_v48 = vld [vmem:[%s713_s1] sm:$0xff]  ;;  %v342_v49 = vld [vmem:[%s713_s1 + $0x8] sm:$0xff] }
   0xc   : > { %225 = vst.msk [vmem:[#allocation2 + $0xf8] sm:$0xff] %vm194_vm0, %v583_v0  ;;  %195 = vst.msk [vmem:[#allocation2 + $0x8] sm:$0xff] %vm194_vm0, %v583_v0  ;;  %439 = vmatprep.mubr.f32.mxu0 %v583_v0  ;;  %445 = vmatprep.mubr.f32.mxu1 %v583_v0  ;;  %s522_s12 = sshll.u32 %s717_s10, 4  ;;  %vm335_vm2 = vcmask 769024   ;;  %vm321_vm3 = vcmask 777216   ;;  %vm294_vm4 = vcmask 900096  }
   0xd   : > { %197 = vst.msk [vmem:[#allocation2 + $0x18] sm:$0xff] %vm194_vm0, %v583_v0  ;;  %199 = vst.msk [vmem:[#allocation2 + $0x28] sm:$0xff] %vm194_vm0, %v583_v0  ;;  %v145_v2 = vshrl.u32 %v144_v1, 7  ;;  %s138_s15 = scalar_lea.vmem %s712_s0, %s522_s12  ;;  %vm280_vm5 = vcmask 908288   ;;  %vm266_vm6 = vcmask 916480   ;;  %vm252_vm7 = vcmask 1031168  }
   0xe   : > { %201 = vst.msk [vmem:[#allocation2 + $0x38] sm:$0xff] %vm194_vm0, %v583_v0  ;;  %203 = vst.msk [vmem:[#allocation2 + $0x48] sm:$0xff] %vm194_vm0, %v583_v0  ;;  %v660_v4 = vld [vmem:[%s138_s15] sm:$0xff]  ;;  %v328_v5 = vld [vmem:[%s138_s15 + $0x8] sm:$0xff]  ;;  %vm238_vm8 = vcmask 1039360   ;;  %s523_s28 = sshll.u32 %s717_s10, 5 }
   0xf   : > { %205 = vst.msk [vmem:[#allocation2 + $0x58] sm:$0xff] %vm194_vm0, %v583_v0  ;;  %207 = vst.msk [vmem:[#allocation2 + $0x68] sm:$0xff] %vm194_vm0, %v583_v0  ;;  %v154_v3 = vadd.s32 72, %v145_v2  ;;  %331 = vrot.lane.b32.xlu0 %v660_v4, %s584_s16  ;;  %317 = vrot.lane.b32.xlu1 %v660_v4, %s585_s17  ;;  %s143_s3 = scalar_lea.vmem %s714_s2, %s523_s28 }
  0x10   : > { %209 = vst.msk [vmem:[#allocation2 + $0x78] sm:$0xff] %vm194_vm0, %v583_v0  ;;  %211 = vst.msk [vmem:[#allocation2 + $0x88] sm:$0xff] %vm194_vm0, %v583_v0 }
  0x11   : > { %215 = vst.msk [vmem:[#allocation2 + $0xa8] sm:$0xff] %vm194_vm0, %v583_v0  ;;  %217 = vst.msk [vmem:[#allocation2 + $0xb8] sm:$0xff] %vm194_vm0, %v583_v0  ;;  %vm170_vm1 = vcmp.eq.s32.totalorder %v154_v3, 72 }
  0x12   : > { %219 = vst.msk [vmem:[#allocation2 + $0xc8] sm:$0xff] %vm194_vm0, %v583_v0  ;;  %221 = vst.msk [vmem:[#allocation2 + $0xd8] sm:$0xff] %vm194_vm0, %v583_v0  ;;  %v186_v7 = vsel %vm170_vm1, 1.0, %v583_v0 }
  0x13   : > { %223 = vst.msk [vmem:[#allocation2 + $0xe8] sm:$0xff] %vm194_vm0, %v583_v0  ;;  %229 = vst.msk [vmem:[#allocation2 + $0x8] sm:$0xff] %vm194_vm0, %v328_v5  ;;  %v374_v6 = vld [vmem:[#allocation2 + $0xf8] sm:$0xff]  ;;  %333 = vrot.lane.b32.xlu0 %v328_v5, %s584_s16  ;;  %319 = vrot.lane.b32.xlu1 %v328_v5, %s585_s17 }
  0x14   : > { %375 = vmatprep.subr.mxu0 %v374_v6  ;;  %524 = vmatprep.subr.mxu1 %v374_v6  ;;  %213 = vst.msk [vmem:[#allocation2 + $0x98] sm:$0xff] %vm194_vm0, %v186_v7 }
  0x15   : > { %376 = vmatpush1.msra.mxu0 %v583_v0  ;;  %540 = vmatpush1.msra.mxu1 %v583_v0 }
  0x17   : > { %306 = vrot.lane.b32.xlu1 %v328_v5, %s586_s18  ;;  %304 = vrot.lane.b32.xlu0 %v660_v4, %s586_s18 }
  0x18   : > { %v366_v11 = vld [vmem:[#allocation2 + $0xb8] sm:$0xff]  ;;  %v364_v12 = vld [vmem:[#allocation2 + $0xa8] sm:$0xff] }
  0x19   : > { %v370_v9 = vld [vmem:[#allocation2 + $0xd8] sm:$0xff]  ;;  %v368_v10 = vld [vmem:[#allocation2 + $0xc8] sm:$0xff] }
  0x1a   : > { %v372_v8 = vld [vmem:[#allocation2 + $0xe8] sm:$0xff] }
  0x1b   : > { %377 = vmatprep.subr.mxu0 %v372_v8  ;;  %525 = vmatprep.subr.mxu1 %v372_v8  ;;  %v362_v13 = vld [vmem:[#allocation2 + $0x98] sm:$0xff]  ;;  %v344_v47 = vld [vmem:[#allocation2 + $0x8] sm:$0xff] }
  0x1c   : > { %378 = vmatpush1.msra.mxu0 %v583_v0  ;;  %541 = vmatpush1.msra.mxu1 %v583_v0 }
  0x1d   : > { %379 = vmatprep.subr.mxu0 %v370_v9  ;;  %526 = vmatprep.subr.mxu1 %v370_v9 }
  0x1e   : > { %380 = vmatpush1.msra.mxu0 %v583_v0  ;;  %542 = vmatpush1.msra.mxu1 %v583_v0 }
  0x1f   : > { %381 = vmatprep.subr.mxu0 %v368_v10  ;;  %527 = vmatprep.subr.mxu1 %v368_v10 }
  0x20   : > { %382 = vmatpush1.msra.mxu0 %v583_v0  ;;  %543 = vmatpush1.msra.mxu1 %v583_v0 }
  0x21   : > { %292 = vrot.lane.b32.xlu1 %v328_v5, %s587_s19  ;;  %290 = vrot.lane.b32.xlu0 %v660_v4, %s587_s19 }
  0x22   : > { %383 = vmatprep.subr.mxu0 %v366_v11  ;;  %528 = vmatprep.subr.mxu1 %v366_v11 }
  0x23   : > { %384 = vmatpush1.msra.mxu0 %v583_v0  ;;  %544 = vmatpush1.msra.mxu1 %v583_v0 }
  0x24   : > { %385 = vmatprep.subr.mxu0 %v364_v12  ;;  %529 = vmatprep.subr.mxu1 %v364_v12 }
  0x25   : > { %278 = vrot.lane.b32.xlu1 %v328_v5, %s588_s20  ;;  %276 = vrot.lane.b32.xlu0 %v660_v4, %s588_s20 }
  0x26   : > { %386 = vmatpush1.msra.mxu0 %v583_v0  ;;  %545 = vmatpush1.msra.mxu1 %v583_v0 }
  0x27   : > { %387 = vmatprep.subr.mxu0 %v362_v13  ;;  %530 = vmatprep.subr.mxu1 %v362_v13 }
  0x28   : > { %573 = vmatpush1.msk.msra.mxu0 %vm170_vm1, %v589_v14  ;;  %574 = vmatpush1.msk.msra.mxu1 %vm170_vm1, %v589_v14 }
  0x29   : > { %264 = vrot.lane.b32.xlu1 %v328_v5, %s590_s21  ;;  %262 = vrot.lane.b32.xlu0 %v660_v4, %s590_s21 }
  0x2d   : > { %250 = vrot.lane.b32.xlu1 %v328_v5, %s591_s22  ;;  %248 = vrot.lane.b32.xlu0 %v660_v4, %s591_s22 }
  0x31   : > { %236 = vrot.lane.b32.xlu1 %v328_v5, %s592_s23  ;;  %234 = vrot.lane.b32.xlu0 %v660_v4, %s592_s23 }
  0x81   : > { %v332_v15 = vpop.permute.xlu0 %331  ;;  %v318_v16 = vpop.permute.xlu1 %317 }
  0x85   : > { %v334_v17 = vpop.permute.xlu0 %333  ;;  %v320_v18 = vpop.permute.xlu1 %319 }
  0x86   : > { %v336_v19 = vsel %vm335_vm2, %v332_v15, %v334_v17  ;;  %340 = vst.msk [vmem:[#allocation2 + $0x88] sm:$0xff] %vm335_vm2, %v334_v17  ;;  %v322_v20 = vsel %vm321_vm3, %v318_v16, %v320_v18 }
  0x87   : > { %326 = vst.msk [vmem:[#allocation2 + $0x78] sm:$0xff] %vm321_vm3, %v320_v18 }
  0x89   : > { %v307_v21 = vpop.permute.xlu1 %306  ;;  %v305_v22 = vpop.permute.xlu0 %304 }
  0x8a   : > { %312 = vst.msk [vmem:[#allocation2 + $0x68] sm:$0xff] %vm194_vm0, %v307_v21  ;;  %v308_v23 = vsel %vm194_vm0, %v305_v22, %v307_v21 }
  0x8d   : > { %v360_v26 = vld [vmem:[#allocation2 + $0x88] sm:$0xff] }
  0x8e   : > { %389 = vmatprep.subr.mxu0 %v360_v26  ;;  %531 = vmatprep.subr.mxu1 %v360_v26  ;;  %v358_v28 = vld [vmem:[#allocation2 + $0x78] sm:$0xff] }
  0x8f   : > { %390 = vmatpush1.msra.mxu0 %v336_v19  ;;  %547 = vmatpush1.msra.mxu1 %v336_v19 }
  0x90   : > { %391 = vmatprep.subr.mxu0 %v358_v28  ;;  %532 = vmatprep.subr.mxu1 %v358_v28 }
  0x91   : > { %392 = vmatpush1.msra.mxu0 %v322_v20  ;;  %548 = vmatpush1.msra.mxu1 %v322_v20  ;;  %v356_v31 = vld [vmem:[#allocation2 + $0x68] sm:$0xff] }
  0x92   : > { %393 = vmatprep.subr.mxu0 %v356_v31  ;;  %533 = vmatprep.subr.mxu1 %v356_v31 }
  0x93   : > { %v293_v24 = vpop.permute.xlu1 %292  ;;  %v291_v25 = vpop.permute.xlu0 %290  ;;  %394 = vmatpush1.msra.mxu0 %v308_v23  ;;  %549 = vmatpush1.msra.mxu1 %v308_v23 }
  0x94   : > { %299 = vst.msk [vmem:[#allocation2 + $0x58] sm:$0xff] %vm194_vm0, %v293_v24  ;;  %v295_v27 = vsel %vm294_vm4, %v291_v25, %v293_v24 }
  0x97   : > { %v279_v29 = vpop.permute.xlu1 %278  ;;  %v277_v30 = vpop.permute.xlu0 %276 }
  0x98   : > { %285 = vst.msk [vmem:[#allocation2 + $0x48] sm:$0xff] %vm194_vm0, %v279_v29  ;;  %v281_v32 = vsel %vm280_vm5, %v277_v30, %v279_v29 }
  0x9b   : > { %v265_v33 = vpop.permute.xlu1 %264  ;;  %v263_v34 = vpop.permute.xlu0 %262  ;;  %v354_v35 = vld [vmem:[#allocation2 + $0x58] sm:$0xff] }
  0x9c   : > { %271 = vst.msk [vmem:[#allocation2 + $0x38] sm:$0xff] %vm194_vm0, %v265_v33  ;;  %v267_v36 = vsel %vm266_vm6, %v263_v34, %v265_v33  ;;  %395 = vmatprep.subr.mxu0 %v354_v35  ;;  %534 = vmatprep.subr.mxu1 %v354_v35 }
  0x9d   : > { %396 = vmatpush1.msra.mxu0 %v295_v27  ;;  %550 = vmatpush1.msra.mxu1 %v295_v27 }
  0x9f   : > { %v251_v37 = vpop.permute.xlu1 %250  ;;  %v249_v38 = vpop.permute.xlu0 %248  ;;  %v352_v39 = vld [vmem:[#allocation2 + $0x48] sm:$0xff] }
  0xa0   : > { %257 = vst.msk [vmem:[#allocation2 + $0x28] sm:$0xff] %vm194_vm0, %v251_v37  ;;  %v253_v40 = vsel %vm252_vm7, %v249_v38, %v251_v37  ;;  %397 = vmatprep.subr.mxu0 %v352_v39  ;;  %535 = vmatprep.subr.mxu1 %v352_v39 }
  0xa1   : > { %398 = vmatpush1.msra.mxu0 %v281_v32  ;;  %551 = vmatpush1.msra.mxu1 %v281_v32 }
  0xa3   : > { %v237_v41 = vpop.permute.xlu1 %236  ;;  %v235_v42 = vpop.permute.xlu0 %234  ;;  %v350_v43 = vld [vmem:[#allocation2 + $0x38] sm:$0xff] }
  0xa4   : > { %243 = vst.msk [vmem:[#allocation2 + $0x18] sm:$0xff] %vm194_vm0, %v237_v41  ;;  %v239_v44 = vsel %vm238_vm8, %v235_v42, %v237_v41  ;;  %399 = vmatprep.subr.mxu0 %v350_v43  ;;  %536 = vmatprep.subr.mxu1 %v350_v43 }
  0xa5   : > { %400 = vmatpush1.msra.mxu0 %v267_v36  ;;  %552 = vmatpush1.msra.mxu1 %v267_v36 }
  0xa7   : > { %v348_v45 = vld [vmem:[#allocation2 + $0x28] sm:$0xff] }
  0xa8   : > { %401 = vmatprep.subr.mxu0 %v348_v45  ;;  %537 = vmatprep.subr.mxu1 %v348_v45 }
  0xa9   : > { %402 = vmatpush1.msra.mxu0 %v253_v40  ;;  %553 = vmatpush1.msra.mxu1 %v253_v40 }
  0xab   : > { %v346_v46 = vld [vmem:[#allocation2 + $0x18] sm:$0xff] }
  0xac   : > { %403 = vmatprep.subr.mxu0 %v346_v46  ;;  %538 = vmatprep.subr.mxu1 %v346_v46 }
  0xad   : > { %404 = vmatpush1.msra.mxu0 %v239_v44  ;;  %554 = vmatpush1.msra.mxu1 %v239_v44 }
  0xae   : > { %405 = vmatprep.subr.mxu0 %v344_v47  ;;  %539 = vmatprep.subr.mxu1 %v344_v47 }
  0xaf   : > { %406 = vmatpush1.msra.mxu0 %v660_v4  ;;  %555 = vmatpush1.msra.mxu1 %v660_v4 }
  0xb0   : > { %440 = vmatmul.mubr.f32.vlgmr.msra.gmra.mxu0 %v341_v48  ;;  %446 = vmatmul.mubr.f32.vlgmr.msra.gmra.mxu1 %v342_v49 }
 0x170   : > { %v441_v50 = vpop.f32.mrf.mxu0  ;;  %v447_v51 = vpop.f32.mrf.mxu1 }
 0x171   : > { %452 = vst [vmem:[%s143_s3] sm:$0xff] %v441_v50  ;;  %454 = vst [vmem:[%s143_s3 + $0x10] sm:$0xff] %v447_v51 }
 0x172   : > { %v443_v52 = vpop.f32.mrf.mxu0  ;;  %v449_v53 = vpop.f32.mrf.mxu1 }
 0x173   : > { %453 = vst.msk [vmem:[%s143_s3 + $0x8] sm:$0xff] %vm194_vm0, %v443_v52  ;;  %455 = vst.msk [vmem:[%s143_s3 + $0x18] sm:$0xff] %vm194_vm0, %v449_v53 }
 0x174 PF: > { %s12_s9 = sadd.s32 1, %s581_s9  }
 0x175   : > { %p9_p4 = scmp.ge.s32.totalorder %s12_s9, 4  }
 0x177   :  { %11 = sbr.rel (!%p9_p4) target bundleno = 1 (0x1), region = 58 }

</bundles_post_ra>
